<compile_context>
chip_gen: v7x
topology: tpu7x:2x2x1
jax: 0.10.0
libtpu: 0.0.40
codegen_flags: <defaults>
</compile_context>

<pallas_src>
import functools

import jax
import jax.numpy as jnp
from jax.experimental import pallas as pl
from jax.experimental.pallas import tpu as pltpu


def _round_up(x, m):
    return (x + m - 1) // m * m


def _vae_kernel(
    # inputs
    x_ref, eps_ref,
    w_e1_ref, b_e1_ref, w_e2_ref, b_e2_ref,
    w_head_ref, b_head_ref,
    w_d1_ref, b_d1_ref, w_d2_ref, b_d2_ref, w_d3_ref, b_d3_ref,
    # outputs
    xrec_ref, mulv_ref,
    *, latent_dim,
):
    cdt = w_e1_ref.dtype  # compute (matmul input) dtype, e.g. bfloat16

    # ---- encoder: Linear -> ReLU -> Linear -> ReLU ----
    x = x_ref[...]
    h = jnp.dot(x, w_e1_ref[...], preferred_element_type=jnp.float32) + b_e1_ref[...]
    h = jnp.maximum(h, 0.0).astype(cdt)
    h = jnp.dot(h, w_e2_ref[...], preferred_element_type=jnp.float32) + b_e2_ref[...]
    h = jnp.maximum(h, 0.0).astype(cdt)

    # ---- fused latent heads: one MXU pass producing [mu | log_var | 0-pad] ----
    head = jnp.dot(h, w_head_ref[...], preferred_element_type=jnp.float32) + b_head_ref[...]
    mu = head[:, :latent_dim]
    log_var = head[:, latent_dim:2 * latent_dim]

    # ---- reparameterize: z = mu + eps * exp(0.5 * log_var)  (f32 math) ----
    std = jnp.exp(0.5 * log_var)
    z = (mu + eps_ref[...] * std).astype(cdt)

    # ---- decoder: Linear -> ReLU -> Linear -> ReLU -> Linear ----
    d = jnp.dot(z, w_d1_ref[...], preferred_element_type=jnp.float32) + b_d1_ref[...]
    d = jnp.maximum(d, 0.0).astype(cdt)
    d = jnp.dot(d, w_d2_ref[...], preferred_element_type=jnp.float32) + b_d2_ref[...]
    d = jnp.maximum(d, 0.0).astype(cdt)
    x_recon = jnp.dot(d, w_d3_ref[...], preferred_element_type=jnp.float32) + b_d3_ref[...]

    xrec_ref[...] = x_recon.astype(xrec_ref.dtype)
    mulv_ref[...] = head.astype(mulv_ref.dtype)  # lane-dense packed [mu | log_var | pad]


def init_vae_params(key, input_dim, hidden_dim, latent_dim, dtype=jnp.float32):
    """Deterministic param init. Weights stored as (in, out), biases as (1, out)."""
    dims = [
        ("e1", input_dim, hidden_dim),
        ("e2", hidden_dim, hidden_dim),
        ("mu", hidden_dim, latent_dim),
        ("var", hidden_dim, latent_dim),
        ("d1", latent_dim, hidden_dim),
        ("d2", hidden_dim, hidden_dim),
        ("d3", hidden_dim, input_dim),
    ]
    params = {}
    keys = jax.random.split(key, len(dims) * 2)
    for i, (name, fan_in, fan_out) in enumerate(dims):
        bound = 1.0 / jnp.sqrt(jnp.asarray(fan_in, dtype=jnp.float32))
        params[f"w_{name}"] = jax.random.uniform(
            keys[2 * i], (fan_in, fan_out), dtype, -bound, bound)
        params[f"b_{name}"] = jax.random.uniform(
            keys[2 * i + 1], (1, fan_out), dtype, -bound, bound)
    return params


@functools.partial(jax.jit, static_argnames=("block_rows", "compute_dtype"))
def vae_forward(x, eps, params, *, block_rows=256, compute_dtype=jnp.bfloat16):
    batch, input_dim = x.shape
    hidden_dim = params["w_e1"].shape[1]
    latent_dim = params["w_mu"].shape[1]
    cdt_size = jnp.dtype(compute_dtype).itemsize

    # ---- fuse + lane-pad the latent heads: (hidden, 2L) -> (hidden, Lp) ----
    two_l = 2 * latent_dim
    lp = _round_up(two_l, 128)                     # lane-dense packed head width
    w_head = jnp.concatenate([params["w_mu"], params["w_var"]], axis=1)
    b_head = jnp.concatenate([params["b_mu"], params["b_var"]], axis=1)
    if lp > two_l:
        w_head = jnp.pad(w_head, ((0, 0), (0, lp - two_l)))
        b_head = jnp.pad(b_head, ((0, 0), (0, lp - two_l)))

    # ---- batch tiling (multiple of 16 rows for bf16 sublane packing) ----
    tb = min(_round_up(block_rows, 16), _round_up(batch, 16))
    batch_p = _round_up(batch, tb)
    n_blocks = batch_p // tb
    if batch_p > batch:
        x = jnp.pad(x, ((0, batch_p - batch), (0, 0)))
        eps = jnp.pad(eps, ((0, batch_p - batch), (0, 0)))

    # ---- dtype casts at the kernel boundary ----
    x_c = x.astype(compute_dtype)
    eps_f = eps.astype(jnp.float32)
    w = lambda n: params[f"w_{n}"].astype(compute_dtype)
    b = lambda n: params[f"b_{n}"].astype(jnp.float32)

    inputs = (
        x_c, eps_f,
        w("e1"), b("e1"), w("e2"), b("e2"),
        w_head.astype(compute_dtype), b_head.astype(jnp.float32),
        w("d1"), b("d1"), w("d2"), b("d2"), w("d3"), b("d3"),
    )

    # ---- BlockSpecs: batch-tiled activations, grid-resident params ----
    def resident(arr):
        return pl.BlockSpec(arr.shape, lambda i: (0,) * arr.ndim)

    in_specs = [
        pl.BlockSpec((tb, input_dim), lambda i: (i, 0)),    # x
        pl.BlockSpec((tb, latent_dim), lambda i: (i, 0)),   # eps
    ] + [resident(a) for a in inputs[2:]]

    out_specs = (
        pl.BlockSpec((tb, input_dim), lambda i: (i, 0)),    # x_recon
        pl.BlockSpec((tb, lp), lambda i: (i, 0)),           # packed [mu | log_var]
    )
    out_shapes = (
        jax.ShapeDtypeStruct((batch_p, input_dim), jnp.float32),
        jax.ShapeDtypeStruct((batch_p, lp), jnp.float32),
    )

    # ---- explicit VMEM budget (raise the scoped limit only if needed) ----
    w_elems = (input_dim * hidden_dim + hidden_dim * hidden_dim + hidden_dim * lp
               + latent_dim * hidden_dim + hidden_dim * hidden_dim + hidden_dim * input_dim)
    b_elems = 4 * hidden_dim + lp + input_dim
    tile_bytes = tb * (input_dim * cdt_size + latent_dim * 4 + input_dim * 4 + lp * 4)
    vmem_est = 2 * (w_elems * cdt_size + b_elems * 4) + 2 * tile_bytes  # double-buffer bound
    default_scoped = 32 * 1024 * 1024
    vmem_limit = None
    if int(vmem_est * 1.25) > default_scoped:
        vmem_limit = int(min(vmem_est * 1.25, 64 * 1024 * 1024))  # stay under v7x physical

    cost = pl.CostEstimate(
        flops=int(2 * batch_p * w_elems),
        transcendentals=int(batch_p * latent_dim),
        bytes_accessed=int(batch_p * input_dim * cdt_size + batch_p * latent_dim * 4
                           + w_elems * cdt_size + b_elems * 4
                           + batch_p * input_dim * 4 + batch_p * lp * 4),
    )

    x_recon_p, mulv_p = pl.pallas_call(
        functools.partial(_vae_kernel, latent_dim=latent_dim),
        grid=(n_blocks,),
        in_specs=in_specs,
        out_specs=out_specs,
        out_shape=out_shapes,
        compiler_params=pltpu.CompilerParams(
            dimension_semantics=("parallel",),
            vmem_limit_bytes=vmem_limit,
        ),
        cost_estimate=cost,
    )(*inputs)

    x_recon = x_recon_p[:batch]
    mu = mulv_p[:batch, :latent_dim]
    log_var = mulv_p[:batch, latent_dim:two_l]
    return x_recon, mu, log_var


def vae_forward_ref(x, eps, params, compute_dtype=jnp.bfloat16):
    """Pure-JAX reference mirroring the kernel's mixed-precision recipe."""
    f32 = jnp.float32
    c = lambda a: a.astype(compute_dtype)
    h = jnp.maximum(jnp.dot(c(x), c(params["w_e1"]), preferred_element_type=f32)
                    + params["b_e1"], 0.0)
    h = jnp.maximum(jnp.dot(c(h), c(params["w_e2"]), preferred_element_type=f32)
                    + params["b_e2"], 0.0)
    mu = jnp.dot(c(h), c(params["w_mu"]), preferred_element_type=f32) + params["b_mu"]
    log_var = jnp.dot(c(h), c(params["w_var"]), preferred_element_type=f32) + params["b_var"]
    z = mu + eps * jnp.exp(0.5 * log_var)
    d = jnp.maximum(jnp.dot(c(z), c(params["w_d1"]), preferred_element_type=f32)
                    + params["b_d1"], 0.0)
    d = jnp.maximum(jnp.dot(c(d), c(params["w_d2"]), preferred_element_type=f32)
                    + params["b_d2"], 0.0)
    x_recon = jnp.dot(c(d), c(params["w_d3"]), preferred_element_type=f32) + params["b_d3"]
    return x_recon, mu, log_var


if __name__ == "__main__":
    # Small shapes consistent with the module's forward (x: (batch, input_dim)).
    batch, input_dim, hidden_dim, latent_dim = 8, 16, 32, 8

    root = jax.random.PRNGKey(0)
    k_params, k_x, k_eps = jax.random.split(root, 3)

    params = init_vae_params(k_params, input_dim, hidden_dim, latent_dim)
    x = jax.random.normal(k_x, (batch, input_dim), jnp.float32)
    # torch.randn_like(std) equivalent, drawn once in the wrapper for determinism.
    eps = jax.random.normal(k_eps, (batch, latent_dim), jnp.float32)

    x_recon, mu, log_var = vae_forward(x, eps, params)
    jax.block_until_ready((x_recon, mu, log_var))

    # sanity check against the pure-JAX mixed-precision reference
    xr_ref, mu_ref, lv_ref = vae_forward_ref(x, eps, params)
    assert x_recon.shape == (batch, input_dim)
    assert mu.shape == (batch, latent_dim) and log_var.shape == (batch, latent_dim)
    assert jnp.allclose(x_recon, xr_ref, atol=2e-2, rtol=2e-2)
    assert jnp.allclose(mu, mu_ref, atol=2e-2, rtol=2e-2)
    assert jnp.allclose(log_var, lv_ref, atol=2e-2, rtol=2e-2)

    print("KERNEL_OK")
</pallas_src>

<mosaic_0001>
module attributes {stable_mosaic.version = 11 : i64} {
  func.func @_vae_kernel(%arg0: i32, %arg1: memref<16x16xbf16, #tpu.memory_space<vmem>>, %arg2: memref<16x8xf32, #tpu.memory_space<vmem>>, %arg3: memref<16x32xbf16, #tpu.memory_space<vmem>>, %arg4: memref<1x32xf32, #tpu.memory_space<vmem>>, %arg5: memref<32x32xbf16, #tpu.memory_space<vmem>>, %arg6: memref<1x32xf32, #tpu.memory_space<vmem>>, %arg7: memref<32x128xbf16, #tpu.memory_space<vmem>>, %arg8: memref<1x128xf32, #tpu.memory_space<vmem>>, %arg9: memref<8x32xbf16, #tpu.memory_space<vmem>>, %arg10: memref<1x32xf32, #tpu.memory_space<vmem>>, %arg11: memref<32x32xbf16, #tpu.memory_space<vmem>>, %arg12: memref<1x32xf32, #tpu.memory_space<vmem>>, %arg13: memref<32x16xbf16, #tpu.memory_space<vmem>>, %arg14: memref<1x16xf32, #tpu.memory_space<vmem>>, %arg15: memref<16x16xf32, #tpu.memory_space<vmem>>, %arg16: memref<16x128xf32, #tpu.memory_space<vmem>>) attributes {dimension_semantics = [#tpu.dimension_semantics<parallel>], iteration_bounds = array<i64: 1>, scalar_prefetch = 0 : i64, scratch_operands = 0 : i64, tpu.core_type = #tpu.core_type<tc>, window_params = [{transform_indices = @transform_0, window_bounds = array<i64: 16, 16>}, {transform_indices = @transform_1, window_bounds = array<i64: 16, 8>}, {pipeline_mode = #tpu.pipeline_mode<synchronous>, transform_indices = @transform_2, window_bounds = array<i64: 16, 32>}, {pipeline_mode = #tpu.pipeline_mode<synchronous>, transform_indices = @transform_3, window_bounds = array<i64: 1, 32>}, {pipeline_mode = #tpu.pipeline_mode<synchronous>, transform_indices = @transform_4, window_bounds = array<i64: 32, 32>}, {pipeline_mode = #tpu.pipeline_mode<synchronous>, transform_indices = @transform_5, window_bounds = array<i64: 1, 32>}, {pipeline_mode = #tpu.pipeline_mode<synchronous>, transform_indices = @transform_6, window_bounds = array<i64: 32, 128>}, {pipeline_mode = #tpu.pipeline_mode<synchronous>, transform_indices = @transform_7, window_bounds = array<i64: 1, 128>}, {pipeline_mode = #tpu.pipeline_mode<synchronous>, transform_indices = @transform_8, window_bounds = array<i64: 8, 32>}, {pipeline_mode = #tpu.pipeline_mode<synchronous>, transform_indices = @transform_9, window_bounds = array<i64: 1, 32>}, {pipeline_mode = #tpu.pipeline_mode<synchronous>, transform_indices = @transform_10, window_bounds = array<i64: 32, 32>}, {pipeline_mode = #tpu.pipeline_mode<synchronous>, transform_indices = @transform_11, window_bounds = array<i64: 1, 32>}, {pipeline_mode = #tpu.pipeline_mode<synchronous>, transform_indices = @transform_12, window_bounds = array<i64: 32, 16>}, {pipeline_mode = #tpu.pipeline_mode<synchronous>, transform_indices = @transform_13, window_bounds = array<i64: 1, 16>}, {transform_indices = @transform_14, window_bounds = array<i64: 16, 16>}, {transform_indices = @transform_15, window_bounds = array<i64: 16, 128>}]} {
    %c0 = arith.constant 0 : index
    %c0_0 = arith.constant 0 : index
    %0 = vector.load %arg1[%c0, %c0_0] : memref<16x16xbf16, #tpu.memory_space<vmem>>, vector<16x16xbf16>
    %c0_1 = arith.constant 0 : index
    %c0_2 = arith.constant 0 : index
    %1 = vector.load %arg3[%c0_1, %c0_2] : memref<16x32xbf16, #tpu.memory_space<vmem>>, vector<16x32xbf16>
    %cst = arith.constant dense<0.000000e+00> : vector<16x32xf32>
    %2 = tpu.matmul %0, %1, %cst {dimension_numbers = #tpu.dot_dimension_numbers<[1], [0], [0], [1], [0, 0, 1, 1], [], []>} : vector<16x16xbf16>, vector<16x32xbf16>, vector<16x32xf32> -> vector<16x32xf32>
    %c0_3 = arith.constant 0 : index
    %c0_4 = arith.constant 0 : index
    %3 = vector.load %arg4[%c0_3, %c0_4] : memref<1x32xf32, #tpu.memory_space<vmem>>, vector<1x32xf32>
    %4 = vector.broadcast %3 : vector<1x32xf32> to vector<16x32xf32>
    %5 = arith.addf %2, %4 : vector<16x32xf32>
    %cst_5 = arith.constant 0.000000e+00 : f32
    %6 = vector.broadcast %cst_5 : f32 to vector<16x32xf32>
    %7 = arith.maximumf %5, %6 : vector<16x32xf32>
    %8 = arith.truncf %7 : vector<16x32xf32> to vector<16x32xbf16>
    %c0_6 = arith.constant 0 : index
    %c0_7 = arith.constant 0 : index
    %9 = vector.load %arg5[%c0_6, %c0_7] : memref<32x32xbf16, #tpu.memory_space<vmem>>, vector<32x32xbf16>
    %cst_8 = arith.constant dense<0.000000e+00> : vector<16x32xf32>
    %10 = tpu.matmul %8, %9, %cst_8 {dimension_numbers = #tpu.dot_dimension_numbers<[1], [0], [0], [1], [0, 0, 1, 1], [], []>} : vector<16x32xbf16>, vector<32x32xbf16>, vector<16x32xf32> -> vector<16x32xf32>
    %c0_9 = arith.constant 0 : index
    %c0_10 = arith.constant 0 : index
    %11 = vector.load %arg6[%c0_9, %c0_10] : memref<1x32xf32, #tpu.memory_space<vmem>>, vector<1x32xf32>
    %12 = vector.broadcast %11 : vector<1x32xf32> to vector<16x32xf32>
    %13 = arith.addf %10, %12 : vector<16x32xf32>
    %cst_11 = arith.constant 0.000000e+00 : f32
    %14 = vector.broadcast %cst_11 : f32 to vector<16x32xf32>
    %15 = arith.maximumf %13, %14 : vector<16x32xf32>
    %16 = arith.truncf %15 : vector<16x32xf32> to vector<16x32xbf16>
    %c0_12 = arith.constant 0 : index
    %c0_13 = arith.constant 0 : index
    %17 = vector.load %arg7[%c0_12, %c0_13] : memref<32x128xbf16, #tpu.memory_space<vmem>>, vector<32x128xbf16>
    %cst_14 = arith.constant dense<0.000000e+00> : vector<16x128xf32>
    %18 = tpu.matmul %16, %17, %cst_14 {dimension_numbers = #tpu.dot_dimension_numbers<[1], [0], [0], [1], [0, 0, 1, 1], [], []>} : vector<16x32xbf16>, vector<32x128xbf16>, vector<16x128xf32> -> vector<16x128xf32>
    %c0_15 = arith.constant 0 : index
    %c0_16 = arith.constant 0 : index
    %19 = vector.load %arg8[%c0_15, %c0_16] : memref<1x128xf32, #tpu.memory_space<vmem>>, vector<1x128xf32>
    %20 = vector.broadcast %19 : vector<1x128xf32> to vector<16x128xf32>
    %21 = arith.addf %18, %20 : vector<16x128xf32>
    %22 = vector.extract_strided_slice %21 {offsets = [0, 0], sizes = [16, 8], strides = [1, 1]} : vector<16x128xf32> to vector<16x8xf32>
    %23 = vector.extract_strided_slice %21 {offsets = [0, 8], sizes = [16, 8], strides = [1, 1]} : vector<16x128xf32> to vector<16x8xf32>
    %cst_17 = arith.constant 5.000000e-01 : f32
    %24 = vector.broadcast %cst_17 : f32 to vector<16x8xf32>
    %25 = arith.mulf %24, %23 : vector<16x8xf32>
    %26 = math.exp %25 : vector<16x8xf32>
    %c0_18 = arith.constant 0 : index
    %c0_19 = arith.constant 0 : index
    %27 = vector.load %arg2[%c0_18, %c0_19] : memref<16x8xf32, #tpu.memory_space<vmem>>, vector<16x8xf32>
    %28 = arith.mulf %27, %26 : vector<16x8xf32>
    %29 = arith.addf %22, %28 : vector<16x8xf32>
    %30 = arith.truncf %29 : vector<16x8xf32> to vector<16x8xbf16>
    %c0_20 = arith.constant 0 : index
    %c0_21 = arith.constant 0 : index
    %31 = vector.load %arg9[%c0_20, %c0_21] : memref<8x32xbf16, #tpu.memory_space<vmem>>, vector<8x32xbf16>
    %cst_22 = arith.constant dense<0.000000e+00> : vector<16x32xf32>
    %32 = tpu.matmul %30, %31, %cst_22 {dimension_numbers = #tpu.dot_dimension_numbers<[1], [0], [0], [1], [0, 0, 1, 1], [], []>} : vector<16x8xbf16>, vector<8x32xbf16>, vector<16x32xf32> -> vector<16x32xf32>
    %c0_23 = arith.constant 0 : index
    %c0_24 = arith.constant 0 : index
    %33 = vector.load %arg10[%c0_23, %c0_24] : memref<1x32xf32, #tpu.memory_space<vmem>>, vector<1x32xf32>
    %34 = vector.broadcast %33 : vector<1x32xf32> to vector<16x32xf32>
    %35 = arith.addf %32, %34 : vector<16x32xf32>
    %cst_25 = arith.constant 0.000000e+00 : f32
    %36 = vector.broadcast %cst_25 : f32 to vector<16x32xf32>
    %37 = arith.maximumf %35, %36 : vector<16x32xf32>
    %38 = arith.truncf %37 : vector<16x32xf32> to vector<16x32xbf16>
    %c0_26 = arith.constant 0 : index
    %c0_27 = arith.constant 0 : index
    %39 = vector.load %arg11[%c0_26, %c0_27] : memref<32x32xbf16, #tpu.memory_space<vmem>>, vector<32x32xbf16>
    %cst_28 = arith.constant dense<0.000000e+00> : vector<16x32xf32>
    %40 = tpu.matmul %38, %39, %cst_28 {dimension_numbers = #tpu.dot_dimension_numbers<[1], [0], [0], [1], [0, 0, 1, 1], [], []>} : vector<16x32xbf16>, vector<32x32xbf16>, vector<16x32xf32> -> vector<16x32xf32>
    %c0_29 = arith.constant 0 : index
    %c0_30 = arith.constant 0 : index
    %41 = vector.load %arg12[%c0_29, %c0_30] : memref<1x32xf32, #tpu.memory_space<vmem>>, vector<1x32xf32>
    %42 = vector.broadcast %41 : vector<1x32xf32> to vector<16x32xf32>
    %43 = arith.addf %40, %42 : vector<16x32xf32>
    %cst_31 = arith.constant 0.000000e+00 : f32
    %44 = vector.broadcast %cst_31 : f32 to vector<16x32xf32>
    %45 = arith.maximumf %43, %44 : vector<16x32xf32>
    %46 = arith.truncf %45 : vector<16x32xf32> to vector<16x32xbf16>
    %c0_32 = arith.constant 0 : index
    %c0_33 = arith.constant 0 : index
    %47 = vector.load %arg13[%c0_32, %c0_33] : memref<32x16xbf16, #tpu.memory_space<vmem>>, vector<32x16xbf16>
    %cst_34 = arith.constant dense<0.000000e+00> : vector<16x16xf32>
    %48 = tpu.matmul %46, %47, %cst_34 {dimension_numbers = #tpu.dot_dimension_numbers<[1], [0], [0], [1], [0, 0, 1, 1], [], []>} : vector<16x32xbf16>, vector<32x16xbf16>, vector<16x16xf32> -> vector<16x16xf32>
    %c0_35 = arith.constant 0 : index
    %c0_36 = arith.constant 0 : index
    %49 = vector.load %arg14[%c0_35, %c0_36] : memref<1x16xf32, #tpu.memory_space<vmem>>, vector<1x16xf32>
    %50 = vector.broadcast %49 : vector<1x16xf32> to vector<16x16xf32>
    %51 = arith.addf %48, %50 : vector<16x16xf32>
    %c0_37 = arith.constant 0 : index
    %c0_38 = arith.constant 0 : index
    %52 = vector.load %arg15[%c0_37, %c0_38] : memref<16x16xf32, #tpu.memory_space<vmem>>, vector<16x16xf32>
    tpu.vector_store %arg15[%c0_37, %c0_38], %51 {strides = array<i32>} : memref<16x16xf32, #tpu.memory_space<vmem>>, vector<16x16xf32>,
    %c0_39 = arith.constant 0 : index
    %c0_40 = arith.constant 0 : index
    %53 = vector.load %arg16[%c0_39, %c0_40] : memref<16x128xf32, #tpu.memory_space<vmem>>, vector<16x128xf32>
    tpu.vector_store %arg16[%c0_39, %c0_40], %21 {strides = array<i32>} : memref<16x128xf32, #tpu.memory_space<vmem>>, vector<16x128xf32>,
    return
  }
  func.func @transform_0(%arg0: i32) -> (i32, i32) {
    %c0_i32 = arith.constant 0 : i32
    %c0_i32_0 = arith.constant 0 : i32
    return %arg0, %c0_i32 : i32, i32
  }
  func.func @transform_1(%arg0: i32) -> (i32, i32) {
    %c0_i32 = arith.constant 0 : i32
    %c0_i32_0 = arith.constant 0 : i32
    return %arg0, %c0_i32 : i32, i32
  }
  func.func @transform_2(%arg0: i32) -> (i32, i32) {
    %c0_i32 = arith.constant 0 : i32
    %c0_i32_0 = arith.constant 0 : i32
    %c0_i32_1 = arith.constant 0 : i32
    return %c0_i32, %c0_i32_0 : i32, i32
  }
  func.func @transform_3(%arg0: i32) -> (i32, i32) {
    %c0_i32 = arith.constant 0 : i32
    %c0_i32_0 = arith.constant 0 : i32
    %c0_i32_1 = arith.constant 0 : i32
    return %c0_i32, %c0_i32_0 : i32, i32
  }
  func.func @transform_4(%arg0: i32) -> (i32, i32) {
    %c0_i32 = arith.constant 0 : i32
    %c0_i32_0 = arith.constant 0 : i32
    %c0_i32_1 = arith.constant 0 : i32
    return %c0_i32, %c0_i32_0 : i32, i32
  }
  func.func @transform_5(%arg0: i32) -> (i32, i32) {
    %c0_i32 = arith.constant 0 : i32
    %c0_i32_0 = arith.constant 0 : i32
    %c0_i32_1 = arith.constant 0 : i32
    return %c0_i32, %c0_i32_0 : i32, i32
  }
  func.func @transform_6(%arg0: i32) -> (i32, i32) {
    %c0_i32 = arith.constant 0 : i32
    %c0_i32_0 = arith.constant 0 : i32
    %c0_i32_1 = arith.constant 0 : i32
    return %c0_i32, %c0_i32_0 : i32, i32
  }
  func.func @transform_7(%arg0: i32) -> (i32, i32) {
    %c0_i32 = arith.constant 0 : i32
    %c0_i32_0 = arith.constant 0 : i32
    %c0_i32_1 = arith.constant 0 : i32
    return %c0_i32, %c0_i32_0 : i32, i32
  }
  func.func @transform_8(%arg0: i32) -> (i32, i32) {
    %c0_i32 = arith.constant 0 : i32
    %c0_i32_0 = arith.constant 0 : i32
    %c0_i32_1 = arith.constant 0 : i32
    return %c0_i32, %c0_i32_0 : i32, i32
  }
  func.func @transform_9(%arg0: i32) -> (i32, i32) {
    %c0_i32 = arith.constant 0 : i32
    %c0_i32_0 = arith.constant 0 : i32
    %c0_i32_1 = arith.constant 0 : i32
    return %c0_i32, %c0_i32_0 : i32, i32
  }
  func.func @transform_10(%arg0: i32) -> (i32, i32) {
    %c0_i32 = arith.constant 0 : i32
    %c0_i32_0 = arith.constant 0 : i32
    %c0_i32_1 = arith.constant 0 : i32
    return %c0_i32, %c0_i32_0 : i32, i32
  }
  func.func @transform_11(%arg0: i32) -> (i32, i32) {
    %c0_i32 = arith.constant 0 : i32
    %c0_i32_0 = arith.constant 0 : i32
    %c0_i32_1 = arith.constant 0 : i32
    return %c0_i32, %c0_i32_0 : i32, i32
  }
  func.func @transform_12(%arg0: i32) -> (i32, i32) {
    %c0_i32 = arith.constant 0 : i32
    %c0_i32_0 = arith.constant 0 : i32
    %c0_i32_1 = arith.constant 0 : i32
    return %c0_i32, %c0_i32_0 : i32, i32
  }
  func.func @transform_13(%arg0: i32) -> (i32, i32) {
    %c0_i32 = arith.constant 0 : i32
    %c0_i32_0 = arith.constant 0 : i32
    %c0_i32_1 = arith.constant 0 : i32
    return %c0_i32, %c0_i32_0 : i32, i32
  }
  func.func @transform_14(%arg0: i32) -> (i32, i32) {
    %c0_i32 = arith.constant 0 : i32
    %c0_i32_0 = arith.constant 0 : i32
    return %arg0, %c0_i32 : i32, i32
  }
  func.func @transform_15(%arg0: i32) -> (i32, i32) {
    %c0_i32 = arith.constant 0 : i32
    %c0_i32_0 = arith.constant 0 : i32
    return %arg0, %c0_i32 : i32, i32
  }
}

</mosaic_0001>

<bundles_post_ra>
// kernel: vae_forward.1
= control target key start
LH: loop header
LB: loop body
LE: loop exit
PB: predicated region body
PF: predicated region fallthrough
CT: control target
= control target key end

     0   :  { %v587_v0 = vmov 0.0   ;;  %vm588_vm0 = vmmov 0   ;;  %vm72_vm1 = vcmask 130048   ;;  %vm143_vm2 = vcmask 261120   ;;  %s589_s20 = smov 120   ;;  %s768_s2 = inlined_call_operand.vmem [shape: bf16[16,32], index: 2, kind: input, shape index: {}]   ;;  %s769_s0 = inlined_call_operand.vmem [shape: bf16[16,16], index: 0, kind: input, shape index: {}]   ;;  %s770_s4 = inlined_call_operand.vmem [shape: bf16[32,32], index: 4, kind: input, shape index: {}]   ;;  %s771_s3 = inlined_call_operand.vmem [shape: f32[1,32], index: 3, kind: input, shape index: {}]   ;;  %s772_s6 = inlined_call_operand.vmem [shape: bf16[32,128], index: 6, kind: input, shape index: {}]   ;;  %s773_s5 = inlined_call_operand.vmem [shape: f32[1,32], index: 5, kind: input, shape index: {}]   ;;  %s774_s7 = inlined_call_operand.vmem [shape: f32[1,128], index: 7, kind: input, shape index: {}]   ;;  %s775_s15 = inlined_call_operand.vmem [shape: f32[16,128], index: 15, kind: output, shape index: {1}]   ;;  %s776_s8 = inlined_call_operand.vmem [shape: bf16[8,32], index: 8, kind: input, shape index: {}]   ;;  %s777_s1 = inlined_call_operand.vmem [shape: f32[16,8], index: 1, kind: input, shape index: {}]   ;;  %s778_s10 = inlined_call_operand.vmem [shape: bf16[32,32], index: 10, kind: input, shape index: {}]   ;;  %s779_s9 = inlined_call_operand.vmem [shape: f32[1,32], index: 9, kind: input, shape index: {}]   ;;  %s780_s12 = inlined_call_operand.vmem [shape: bf16[32,16], index: 12, kind: input, shape index: {}]   ;;  %s781_s11 = inlined_call_operand.vmem [shape: f32[1,32], index: 11, kind: input, shape index: {}]   ;;  %s782_s13 = inlined_call_operand.vmem [shape: f32[1,16], index: 13, kind: input, shape index: {}]   ;;  %s783_s14 = inlined_call_operand.vmem [shape: f32[16,16], index: 14, kind: output, shape index: {0}]  }
   0x1   :  { %526 = vmatprep.subr.bf16.mxu0 %v587_v0  ;;  %v573_v1 = vld [vmem:[%s768_s2] sm:$0xff]   ;;  %528 = vmatprep.mubr.msk.bf16.mxu0 %vm588_vm0, %v587_v0  ;;  %v576_v4 = vld [vmem:[%s770_s4 + $0x8] sm:$0xff]   ;;  %vm291_vm3 = vcmask 1043456   ;;  %vm287_vm4 = vcmask 64512  }
   0x2   :  { %v574_v2 = vld [vmem:[%s769_s0] sm:$0xff]   ;;  %532 = vmatprep.subr.bf16.mxu1 %v587_v0  ;;  %536 = vmatprep.mubr.msk.bf16.mxu1 %vm588_vm0, %v587_v0  ;;  %v578_v16 = vld [vmem:[%s772_s6 + $0x8] sm:$0xff]  }
   0x3   :  { %527 = vmatpush3.bf16.msra.mxu0 %v573_v1  ;;  %v575_v3 = vld [vmem:[%s770_s4] sm:$0xff]   ;;  %v265_v44 = vld [vmem:[%s777_s1 + $0x8] sm:$0xff] }
   0x4   :  { %540 = vmatprep.subr.bf16.mxu0 %v587_v0  ;;  %533 = vmatpush3.bf16.msra.mxu1 %v575_v3  ;;  %v488_v5 = vld [vmem:[%s771_s3] ss:$0 sm:$0xff]  ;;  %v580_v52 = vld [vmem:[%s778_s10 + $0x8] sm:$0xff]  }
   0x5   :  { %534 = vmatprep.subr.bf16.mxu1 %v587_v0  ;;  %v577_v15 = vld [vmem:[%s772_s6] sm:$0xff]   ;;  %v582_v1 = vld [vmem:[%s780_s12 + $0x8] sm:$0xff]  }
   0x6   :  { %529 = vmatmul.mubr.msk.bf16.vlgmr.msra.gmra.mrb[0].mxu0 %vm72_vm1, %v574_v2  ;;  %v492_v17 = vld [vmem:[%s773_s5] ss:$0 sm:$0xff] }
   0x7   :  { %544 = vmatprep.mubr.msk.bf16.mxu0 %vm588_vm0, %v587_v0  ;;  %541 = vmatpush3.bf16.msra.mxu0 %v577_v15  ;;  %v496_v27 = vld [vmem:[%s774_s7] ss:$0 sm:$0xff] }
   0x8   :  { %535 = vmatpush3.bf16.msra.mxu1 %v576_v4  ;;  %542 = vmatprep.subr.bf16.mxu0 %v587_v0  ;;  %v279_v38 = vld [vmem:[%s776_s8] sm:$0xf] }
   0x9   :  { %548 = vmatprep.subr.bf16.mxu1 %v587_v0  ;;  %v293_v39 = vsel %vm291_vm3, %v279_v38, 0  ;;  %v264_v42 = vld [vmem:[%s777_s1] sm:$0xff] }
   0xa   :  { %v579_v51 = vld [vmem:[%s778_s10] sm:$0xff]  }
   0xb   :  { %543 = vmatpush3.bf16.msra.mxu0 %v578_v16  ;;  %v500_v53 = vld [vmem:[%s779_s9] ss:$0 sm:$0xff] }
   0xc   :  { %554 = vmatprep.subr.bf16.mxu0 %v587_v0  ;;  %v581_v63 = vld [vmem:[%s780_s12] sm:$0xff]  }
   0xd   :  { %v502_v2 = vld [vmem:[%s781_s11] ss:$0 sm:$0xff] }
  0xd9   :  { %v110_v6 = vpop.f32.mrb[0].mxu0 }
  0xda   :  { %v111_v7 = vadd.f32 %v488_v5, %v110_v6  ;;  %v530_v8 = vpop.f32.mrb[1].mxu0 }
  0xdb   :  { %v113_v9 = vpop.f32.mrb[2].mxu0 }
  0xdc   :  { %v114_v10 = vadd.f32 %v488_v5, %v113_v9  ;;  %v531_v11 = vpop.f32.mrb[3].mxu0  ;;  %v117_v12 = vmax.f32 %v111_v7, 0.0 }
  0xde   :  { %v118_v13 = vmax.f32 %v114_v10, 0.0 }
  0xe0   :  { %v119_v14 = vpack.c.bf16 %v118_v13, %v117_v12 }
  0xe2   :  { %537 = vmatmul.mubr.msk.bf16.vlgmr.msra.gmra.mrb[0].mxu1 %vm143_vm2, %v119_v14 }
  0xe3   :  { %550 = vmatprep.mubr.msk.bf16.mxu1 %vm588_vm0, %v587_v0  ;;  %549 = vmatpush3.bf16.msra.mxu1 %v293_v39 }
  0xe4   :  { %562 = vmatprep.subr.bf16.mxu1 %v587_v0 }
 0x1b5   :  { %v181_v18 = vpop.f32.mrb[0].mxu1 }
 0x1b6   :  { %v182_v19 = vadd.f32 %v492_v17, %v181_v18  ;;  %v538_v20 = vpop.f32.mrb[1].mxu1 }
 0x1b7   :  { %v184_v21 = vpop.f32.mrb[2].mxu1 }
 0x1b8   :  { %v185_v22 = vadd.f32 %v492_v17, %v184_v21  ;;  %v539_v23 = vpop.f32.mrb[3].mxu1  ;;  %v188_v24 = vmax.f32 %v182_v19, 0.0 }
 0x1ba   :  { %v189_v25 = vmax.f32 %v185_v22, 0.0 }
 0x1bc   :  { %v190_v26 = vpack.c.bf16 %v189_v25, %v188_v24 }
 0x1be   :  { %545 = vmatmul.mubr.msk.bf16.vlgmr.msra.gmra.mrb[4].mxu0 %vm143_vm2, %v190_v26 }
 0x1bf   :  { %558 = vmatprep.mubr.msk.bf16.mxu0 %vm588_vm0, %v587_v0  ;;  %555 = vmatpush3.bf16.msra.mxu0 %v579_v51 }
 0x1c0   :  { %556 = vmatprep.subr.bf16.mxu0 %v587_v0 }
 0x1c3   :  { %557 = vmatpush3.bf16.msra.mxu0 %v580_v52 }
 0x291   :  { %v251_v28 = vpop.f32.mrb[4].mxu0 }
 0x292   :  { %v252_v29 = vadd.f32 %v496_v27, %v251_v28  ;;  %v546_v30 = vpop.f32.mrb[5].mxu0 }
 0x293   :  { %v254_v31 = vpop.f32.mrb[6].mxu0 }
 0x294   :  { %v258_v32 = vmul.f32 0.5, %v252_v29  ;;  %478 = vst [vmem:[%s775_s15] sm:$0xff] %v252_v29  ;;  %v255_v33 = vadd.f32 %v496_v27, %v254_v31  ;;  %v547_v34 = vpop.f32.mrb[7].mxu0 }
 0x296   :  { %v260_v35 = vmul.f32 1.442695, %v258_v32  ;;  %v259_v36 = vmul.f32 0.5, %v255_v33  ;;  %479 = vst [vmem:[%s775_s15 + $0x8] sm:$0xff] %v255_v33 }
 0x298   :  { %583 = vpow2.f32 %v260_v35  ;;  %v262_v37 = vmul.f32 1.442695, %v259_v36 }
 0x29a   :  { %585 = vpow2.f32 %v262_v37 }
 0x2a2   :  { %v584_v40 = vpop.eup %583 }
 0x2a3   :  { %268 = vrot.lane.b32.xlu0 %v584_v40, %s589_s20 }
 0x2a4   :  { %v586_v41 = vpop.eup %585 }
 0x2a7   :  { %270 = vrot.lane.b32.xlu0 %v586_v41, %s589_s20 }
 0x315   :  { %v269_v43 = vpop.permute.xlu0 %268 }
 0x316   :  { %v274_v45 = vmul.f32 %v269_v43, %v264_v42 }
 0x318   :  { %v276_v48 = vadd.f32 %v274_v45, %v252_v29 }
 0x319   :  { %v271_v46 = vpop.permute.xlu0 %270 }
 0x31a   :  { %v275_v47 = vmul.f32 %v271_v46, %v265_v44 }
 0x31c   :  { %v277_v49 = vadd.f32 %v275_v47, %v255_v33 }
 0x31e   :  { %v278_v50 = vpack.c.bf16 %v277_v49, %v276_v48 }
 0x320   :  { %551 = vmatmul.mubr.msk.bf16.vlgmr.msra.gmra.mrb[4].mxu1 %vm287_vm4, %v278_v50 }
 0x321   :  { %566 = vmatprep.mubr.msk.bf16.mxu1 %vm588_vm0, %v587_v0  ;;  %563 = vmatpush3.bf16.msra.mxu1 %v581_v63 }
 0x322   :  { %564 = vmatprep.subr.bf16.mxu1 %v587_v0  ;;  %v506_v0 = vld [vmem:[%s782_s13] ss:$0 sm:$0xff] }
 0x325   :  { %565 = vmatpush3.bf16.msra.mxu1 %v582_v1 }
 0x3f3   :  { %v329_v54 = vpop.f32.mrb[4].mxu1 }
 0x3f4   :  { %v330_v55 = vadd.f32 %v500_v53, %v329_v54  ;;  %v552_v56 = vpop.f32.mrb[5].mxu1 }
 0x3f5   :  { %v332_v57 = vpop.f32.mrb[6].mxu1 }
 0x3f6   :  { %v333_v58 = vadd.f32 %v500_v53, %v332_v57  ;;  %v553_v59 = vpop.f32.mrb[7].mxu1  ;;  %v336_v60 = vmax.f32 %v330_v55, 0.0 }
 0x3f8   :  { %v337_v61 = vmax.f32 %v333_v58, 0.0 }
 0x3fa   :  { %v338_v62 = vpack.c.bf16 %v337_v61, %v336_v60 }
 0x3fc   :  { %559 = vmatmul.mubr.msk.bf16.vlgmr.msra.gmra.mrb[8].mxu0 %vm143_vm2, %v338_v62 }
 0x4cf   :  { %v399_v3 = vpop.f32.mrb[8].mxu0 }
 0x4d0   :  { %v400_v4 = vadd.f32 %v502_v2, %v399_v3  ;;  %v560_v5 = vpop.f32.mrb[9].mxu0 }
 0x4d1   :  { %v402_v6 = vpop.f32.mrb[10].mxu0 }
 0x4d2   :  { %v403_v7 = vadd.f32 %v502_v2, %v402_v6  ;;  %v561_v8 = vpop.f32.mrb[11].mxu0  ;;  %v406_v9 = vmax.f32 %v400_v4, 0.0 }
 0x4d4   :  { %v407_v10 = vmax.f32 %v403_v7, 0.0 }
 0x4d6   :  { %v408_v11 = vpack.c.bf16 %v407_v10, %v406_v9 }
 0x4d8   :  { %567 = vmatmul.mubr.msk.bf16.vlgmr.msra.gmra.mrb[8].mxu1 %vm143_vm2, %v408_v11 }
 0x5ab   :  { %v469_v12 = vpop.f32.mrb[8].mxu1 }
 0x5ac   :  { %v470_v13 = vadd.f32 %v506_v0, %v469_v12  ;;  %v568_v14 = vpop.f32.mrb[9].mxu1 }
 0x5ad   :  { %v472_v15 = vpop.f32.mrb[10].mxu1 }
 0x5ae   :  { %476 = vst.msk [vmem:[%s783_s14] sm:$0xff] %vm72_vm1, %v470_v13  ;;  %v473_v16 = vadd.f32 %v506_v0, %v472_v15  ;;  %v569_v17 = vpop.f32.mrb[11].mxu1 }
 0x5b0   :  { %477 = vst.msk [vmem:[%s783_s14 + $0x8] sm:$0xff] %vm72_vm1, %v473_v16 }

</bundles_post_ra>
